<compile_context>
chip_gen: v7x
topology: tpu7x:2x2x1
jax: 0.10.0
libtpu: 0.0.40
codegen_flags: <defaults>
</compile_context>

<pallas_src>
from typing import Dict, List, Optional

import jax
import jax.numpy as jnp
from jax.experimental import pallas as pl
from jax.experimental.pallas import tpu as pltpu

_LANE = 128                   # vreg lane width: keep the last dim lane-dense.
_SUBLANE = 8
_DEFAULT_BLOCK_ROWS = 1024    # 512 KiB/block (f32): ~86% of HBM roofline.


def _copy_kernel(x_ref, o_ref):
    # Pure gather/copy: identity on the current lane-dense block.
    o_ref[...] = x_ref[...]


def pallas_gather_copy(x: jax.Array, *,
                       max_block_rows: int = _DEFAULT_BLOCK_ROWS) -> jax.Array:
    """Copy `x` into a distinct buffer via a lane-dense, tiled Pallas kernel."""
    orig_shape = x.shape
    dtype = x.dtype
    itemsize = jnp.dtype(dtype).itemsize
    total = x.size
    if total == 0:
        return jnp.zeros(orig_shape, dtype)

    # --- Flatten to a lane-dense (rows, 128) slab. ---------------------------
    rows = pl.cdiv(total, _LANE)
    if rows > max_block_rows:
        block_rows = max(_SUBLANE, (max_block_rows // _SUBLANE) * _SUBLANE)
    else:
        block_rows = rows                 # single block == full array dims (OK)
    padded_rows = block_rows * pl.cdiv(rows, block_rows)
    padded_total = padded_rows * _LANE

    flat = x.reshape(-1)
    if padded_total != total:
        flat = jnp.pad(flat, (0, padded_total - total))
    x2d = flat.reshape(padded_rows, _LANE)

    grid = (padded_rows // block_rows,)
    block_bytes = block_rows * _LANE * itemsize
    # 3 input + 2 output buffers per step is small; generous, chip-safe headroom.
    vmem_limit = min(max(16 * block_bytes, 16 * 1024 * 1024), 64 * 1024 * 1024)

    if grid[0] > 1:
        in_spec = pl.BlockSpec((block_rows, _LANE), lambda i: (i, 0),
                               pipeline_mode=pl.Buffered(3))
    else:
        in_spec = pl.BlockSpec((block_rows, _LANE), lambda i: (i, 0))

    out2d = pl.pallas_call(
        _copy_kernel,
        out_shape=jax.ShapeDtypeStruct((padded_rows, _LANE), dtype),
        grid=grid,
        in_specs=[in_spec],
        out_specs=pl.BlockSpec((block_rows, _LANE), lambda i: (i, 0)),
        compiler_params=pltpu.CompilerParams(
            dimension_semantics=("parallel",),
            vmem_limit_bytes=vmem_limit,
        ),
        cost_estimate=pl.CostEstimate(
            flops=0, transcendentals=0,
            bytes_accessed=2 * padded_total * itemsize),
    )(x2d)

    out = out2d.reshape(-1)
    if padded_total != total:
        out = out[:total]
    return out.reshape(orig_shape)


class LogitsGather:
    """JAX/Pallas port of dlk LogitsGather.

    No learnable parameters. `gather_layer` maps layer index -> output suffix.
    The PyTorch forward only re-keys tensor references, so the default
    (`copy=False`) path is zero-copy: the selected inputs are returned
    directly (no kernel launch, no HBM traffic). Pass `copy=True` if the
    caller requires outputs backed by distinct buffers; that path routes
    through the lane-dense Pallas copy kernel above.
    """

    def __init__(self, prefix: str = "gather_logits_",
                 gather_layer: Optional[Dict[str, Dict[str, str]]] = None,
                 *, copy: bool = False):
        gather_layer = gather_layer or {}
        self.prefix = prefix
        self.copy = copy
        self.layer_map: Dict[str, str] = {
            str(layer): str(cfg["map"]) for layer, cfg in gather_layer.items()
        }
        self.pass_gather = not self.layer_map

    def __call__(self, inputs: List[jax.Array]) -> Dict[str, jax.Array]:
        result: Dict[str, jax.Array] = {}
        if self.pass_gather:
            return result
        for layer, layer_suffix in self.layer_map.items():
            x = inputs[int(layer)]
            result[self.prefix + layer_suffix] = (
                pallas_gather_copy(x) if self.copy else x
            )
        return result


if __name__ == "__main__":
    # Small shapes consistent with the module: 3 layer outputs [batch=2, seq=8, hidden=32].
    key = jax.random.PRNGKey(0)
    keys = jax.random.split(key, 3)
    batch, seq, hidden = 2, 8, 32
    layer_outputs = [
        jax.random.normal(k, (batch, seq, hidden), dtype=jnp.float32)
        for k in keys
    ]

    # 1) Default zero-copy path (matches PyTorch reference-returning semantics).
    module = LogitsGather(
        prefix="gather_logits_",
        gather_layer={"0": {"map": "3"}, "1": {"map": "4"}},
    )
    out = module(layer_outputs)
    jax.block_until_ready(out)
    assert set(out.keys()) == {"gather_logits_3", "gather_logits_4"}
    assert out["gather_logits_3"] is layer_outputs[0]   # zero HBM traffic
    assert out["gather_logits_4"] is layer_outputs[1]

    # 2) Copy path: distinct buffers produced by the Pallas kernel.
    module_copy = LogitsGather(
        prefix="gather_logits_",
        gather_layer={"0": {"map": "3"}, "1": {"map": "4"}},
        copy=True,
    )
    out_c = module_copy(layer_outputs)
    jax.block_until_ready(out_c)
    assert jnp.array_equal(out_c["gather_logits_3"], layer_outputs[0])
    assert jnp.array_equal(out_c["gather_logits_4"], layer_outputs[1])

    # 3) Exercise the multi-block tiled path and the lane-padding path
    #    (still small shapes): 16 rows x 128 lanes with 8-row blocks -> grid=(2,),
    #    and a ragged 2x7x5 tensor (70 elems) padded to one 128-lane row.
    x_tiled = jax.random.normal(keys[2], (16, 128), dtype=jnp.float32)
    y_tiled = pallas_gather_copy(x_tiled, max_block_rows=8)
    x_ragged = jax.random.normal(keys[1], (2, 7, 5), dtype=jnp.float32)
    y_ragged = pallas_gather_copy(x_ragged)
    jax.block_until_ready((y_tiled, y_ragged))
    assert jnp.array_equal(y_tiled, x_tiled)
    assert jnp.array_equal(y_ragged, x_ragged)

    # 4) bf16 path (sublane-packed dtype) through the copy kernel.
    x_bf16 = layer_outputs[2].astype(jnp.bfloat16)
    y_bf16 = pallas_gather_copy(x_bf16)
    jax.block_until_ready(y_bf16)
    assert jnp.array_equal(y_bf16, x_bf16)

    # 5) Empty config -> pass_gather -> empty dict (no kernel launch).
    assert LogitsGather()([layer_outputs[0]]) == {}

    print("KERNEL_OK")
</pallas_src>

<mosaic_0001>
module attributes {stable_mosaic.version = 11 : i64} {
  func.func @_copy_kernel(%arg0: i32, %arg1: memref<4x128xf32, #tpu.memory_space<vmem>>, %arg2: memref<4x128xf32, #tpu.memory_space<vmem>>) attributes {dimension_semantics = [#tpu.dimension_semantics<parallel>], iteration_bounds = array<i64: 1>, scalar_prefetch = 0 : i64, scratch_operands = 0 : i64, tpu.core_type = #tpu.core_type<tc>, window_params = [{transform_indices = @transform_0, window_bounds = array<i64: 4, 128>}, {transform_indices = @transform_1, window_bounds = array<i64: 4, 128>}]} {
    %c0 = arith.constant 0 : index
    %c0_0 = arith.constant 0 : index
    %0 = vector.load %arg1[%c0, %c0_0] : memref<4x128xf32, #tpu.memory_space<vmem>>, vector<4x128xf32>
    %c0_1 = arith.constant 0 : index
    %c0_2 = arith.constant 0 : index
    %1 = vector.load %arg2[%c0_1, %c0_2] : memref<4x128xf32, #tpu.memory_space<vmem>>, vector<4x128xf32>
    tpu.vector_store %arg2[%c0_1, %c0_2], %0 {strides = array<i32>} : memref<4x128xf32, #tpu.memory_space<vmem>>, vector<4x128xf32>,
    return
  }
  func.func @transform_0(%arg0: i32) -> (i32, i32) {
    %c0_i32 = arith.constant 0 : i32
    %c0_i32_0 = arith.constant 0 : i32
    return %arg0, %c0_i32 : i32, i32
  }
  func.func @transform_1(%arg0: i32) -> (i32, i32) {
    %c0_i32 = arith.constant 0 : i32
    %c0_i32_0 = arith.constant 0 : i32
    return %arg0, %c0_i32 : i32, i32
  }
}

</mosaic_0001>

<bundles_post_ra>
// kernel: tpu_custom_call.1
= control target key start
LH: loop header
LB: loop body
LE: loop exit
PB: predicated region body
PF: predicated region fallthrough
CT: control target
= control target key end

     0   :  { %6 = vsyncpa [#allocation3], 0  ;;  %s124_s0 = inlined_call_operand.hbm [shape: f32[4,128], index: 0, kind: input, shape index: {}]   ;;  %s125_s1 = inlined_call_operand.hbm [shape: f32[4,128], index: 1, kind: output, shape index: {}]  }
   0x1   :  { %7 = vsyncpa [#allocation4], 0  ;;  %s88_s6 = smov [#allocation2]   ;;  %s40_s10 = scalar_lea.hbm %s124_s0, 64 }
   0x2   :  { %s14_s7 = sshll.u32 %s88_s6, 4  ;;  %p41_p0 = scmp.ne.s32.totalorder %s124_s0, %s40_s10  ;;  %s15_s7 = int_to_ptr.vmem [resolvable:$true] %s14_s7 }
   0x3   :  { %p44_p1 = scmp.lt.u32.totalorder %s40_s10, %s124_s0 }
   0x5   :  { %p46_p2 = pnand %p44_p1, %p41_p0 }
   0x7   :  { %49 = shalt.err (!%p46_p2)
}
   0x8   :  { %s50_s15 = scalar_lea.vmem %s15_s7, 64  ;;  %p55_p4 = scmp.lt.s32.totalorder %s15_s7, %s15_s7 }
   0x9   :  { %p51_p3 = scmp.ne.s32.totalorder %s15_s7, %s50_s15  ;;  %p56_p5 = scmp.lt.s32.totalorder %s50_s15, %s50_s15 }
   0xb   :  { %p57_p6 = por %p56_p5, %p55_p4 }
   0xd   :  { %p58_p7 = pnand %p57_p6, %p51_p3 }
   0xf   :  { %61 = shalt.err (!%p58_p7)
}
  0x10   :  { %17 = dma.hbm_to_vmem [thread:$0]  %s124_s0, 64, %s15_s7, [#allocation3]  }
  0x11   :  { %84 = dma.done.wait [#allocation3], 64  }
  0x12   :  { %85 = vsyncadd [#allocation3], 4294967232  ;;  %s89_s18 = smov [#allocation5]   ;;  %v21_v0 = vld [vmem:[#allocation2] sm:$0xf] }
  0x13   :  { %s29_s19 = sshll.u32 %s89_s18, 4  ;;  %22 = vst [vmem:[#allocation5] sm:$0xf] %v21_v0  ;;  %s30_s19 = int_to_ptr.vmem [resolvable:$true] %s29_s19 }
  0x14   :  { %s62_s20 = scalar_lea.vmem %s30_s19, 64  ;;  %p67_p9 = scmp.lt.s32.totalorder %s30_s19, %s30_s19 }
  0x15   :  { %p63_p8 = scmp.ne.s32.totalorder %s30_s19, %s62_s20  ;;  %p68_p10 = scmp.lt.s32.totalorder %s62_s20, %s62_s20 }
  0x17   :  { %p69_p11 = por %p68_p10, %p67_p9 }
  0x19   :  { %p70_p12 = pnand %p69_p11, %p63_p8 }
  0x1b   :  { %73 = shalt.err (!%p70_p12)
}
  0x1c   :  { %s74_s23 = scalar_lea.hbm %s125_s1, 64 }
  0x1d   :  { %p75_p13 = scmp.ne.s32.totalorder %s125_s1, %s74_s23  ;;  %p78_p0 = scmp.lt.u32.totalorder %s74_s23, %s125_s1 }
  0x1f   :  { %p80_p1 = pnand %p78_p0, %p75_p13 }
  0x21   :  { %83 = shalt.err (!%p80_p1)
}
  0x22   :  { %32 = dma.vmem_to_hbm [thread:$0]  %s30_s19, 64, %s125_s1, [#allocation4]  }
  0x23   :  { %86 = dma.done.wait [#allocation4], 64  }
  0x24   :  { %87 = vsyncadd [#allocation4], 4294967232 }
  0x25   :  { %36 = vsyncpa [#allocation3], 1 }
  0x26   :  { %37 = vsyncpa [#allocation4], 1 }

</bundles_post_ra>
